<compile_context>
chip_gen: v7x
topology: tpu7x:2x2x1
jax: 0.10.0
libtpu: 0.0.40
codegen_flags: <defaults>
</compile_context>

<pallas_src>
import functools

import numpy as np
import jax
import jax.numpy as jnp
from jax import lax
from jax.experimental import pallas as pl
from jax.experimental.pallas import tpu as pltpu


_VMEM_LIMIT_BYTES = 32 * 1024 * 1024     # scoped VMEM limit (safe on v5e/v6e/v7x)
_CHUNK_BUDGET_BYTES = 8 * 1024 * 1024    # budget for streamed chunk payload


# --------------------------------------------------------------------------- #
# Kernels
# --------------------------------------------------------------------------- #

def _rnn_identity_kernel(x_ref, h0_ref, out_ref, hlast_ref, xs_ref, *,
                         hsize, tc, seq_true, needs_mask):
    """Specialized path for the module's fixed weights (W_ih = signed identity,
    W_hh = identity, zero biases).  Matmul-free: pure VPU adds + EUP tanh.

    Shapes (per time chunk, lane-dense bh = batch*hsize):
      x_ref    : (tc, bh)   time-chunk of inputs
      h0_ref   : (1,  bh)
      out_ref  : (tc, bh)
      hlast_ref: (1,  bh)   resident across the time grid (carries h)
      xs_ref   : (tc, bh)   scratch: projected inputs, overwritten by raw h_t
    """
    bh = x_ref.shape[1]

    @pl.when(pl.program_id(0) == 0)
    def _():
        hlast_ref[...] = h0_ref[...]

    # W_ih is a signed identity -> elementwise sign flip, generated in-kernel
    # (no HBM `sign` input).  Applied once for the whole chunk, off the serial
    # path.
    lane = lax.broadcasted_iota(jnp.int32, (1, bh), 1)
    sign = jnp.where(lane % hsize == 0, -1.0, 1.0).astype(jnp.float32)
    xs_ref[...] = x_ref[...] * sign

    base = pl.program_id(0)

    def body(t, h):
        # Serial chain per step: load + add + tanh (hidden state stays in a
        # vreg; the sigmoid epilogue and the wide store are hoisted out).
        h_new = jnp.tanh(xs_ref[pl.ds(t, 1), :] + h)
        if needs_mask:
            h_new = jnp.where(base * tc + t < seq_true, h_new, h)
        xs_ref[pl.ds(t, 1), :] = h_new          # stash raw h_t in place
        return h_new

    unroll = True if tc <= 64 else 16
    h_final = lax.fori_loop(0, tc, body, hlast_ref[...], unroll=unroll)
    hlast_ref[...] = h_final

    # Hoisted epilogue: sigmoid(10*h) == 0.5*(1 + tanh(5*h)), computed once
    # over the whole chunk with a full-width, sublane-dense store.
    out_ref[...] = 0.5 * (1.0 + jnp.tanh(5.0 * xs_ref[...]))


def _rnn_general_kernel(x_ref, h0_ref, wih_t_ref, whh_t_ref, b_ref,
                        out_ref, hlast_ref, xw_ref, *,
                        batch, tc, seq_true, needs_mask):
    """General tanh-RNN step (arbitrary weights).

    Shapes (per time chunk):
      x_ref    : (tc*batch, isize)   time-major chunk of inputs
      h0_ref   : (batch, hsize)
      wih_t_ref: (isize, hsize)      W_ih^T
      whh_t_ref: (hsize, hsize)      W_hh^T
      b_ref    : (1, hsize)          b_ih + b_hh (pre-summed)
      out_ref  : (tc*batch, hsize)
      hlast_ref: (batch, hsize)      resident across the time grid (carries h)
      xw_ref   : (tc*batch, hsize)   scratch: projection, overwritten by raw h_t
    """
    isize = x_ref.shape[1]
    hsize = hlast_ref.shape[1]

    @pl.when(pl.program_id(0) == 0)
    def _():
        hlast_ref[...] = h0_ref[...]

    # Hoisted input projection + both biases for the whole chunk.
    if isize <= 8:
        # Tiny K: VPU broadcast-FMAs instead of a wasted MXU pass.
        acc = x_ref[:, 0:1] * wih_t_ref[0:1, :] + b_ref[...]
        for k in range(1, isize):
            acc = acc + x_ref[:, k:k + 1] * wih_t_ref[k:k + 1, :]
        xw_ref[...] = acc
    else:
        xw_ref[...] = (jnp.dot(x_ref[...], wih_t_ref[...],
                               preferred_element_type=jnp.float32)
                       + b_ref[...])

    # Hoist W_hh rows out of the serial loop (small hsize -> VPU FMAs per step
    # instead of a tiny MXU matmul with its push/pop latency on the critical
    # path).
    use_vpu_hh = hsize <= 16
    whh_rows = ([whh_t_ref[k:k + 1, :] for k in range(hsize)]
                if use_vpu_hh else None)

    base = pl.program_id(0)

    def body(t, h):
        row = pl.multiple_of(t * batch, batch)
        pre = xw_ref[pl.ds(row, batch), :]
        if use_vpu_hh:
            for k in range(hsize):
                pre = pre + h[:, k:k + 1] * whh_rows[k]
        else:
            pre = pre + jnp.dot(h, whh_t_ref[...],
                                preferred_element_type=jnp.float32)
        h_new = jnp.tanh(pre)
        if needs_mask:
            h_new = jnp.where(base * tc + t < seq_true, h_new, h)
        xw_ref[pl.ds(row, batch), :] = h_new     # stash raw h_t in place
        return h_new

    unroll = True if tc <= 64 else 16
    h_final = lax.fori_loop(0, tc, body, hlast_ref[...], unroll=unroll)
    hlast_ref[...] = h_final

    # Hoisted epilogue: sigmoid(10*h) == 0.5*(1 + tanh(5*h)).
    out_ref[...] = 0.5 * (1.0 + jnp.tanh(5.0 * xw_ref[...]))


# --------------------------------------------------------------------------- #
# Wrappers
# --------------------------------------------------------------------------- #

def _choose_time_chunk(seq, requested, row_bytes):
    """Pick a time chunk: requested (or 512), capped by the VMEM byte budget
    and the sequence length, rounded to a multiple of 8 (min 8)."""
    tc = requested if (requested is not None and requested > 0) else 512
    tc = min(tc, max(1, _CHUNK_BUDGET_BYTES // max(row_bytes, 1)))
    tc = min(tc, max(seq, 1))
    tc = max(8, (tc // 8) * 8)
    return tc


def _pad_time(x, seq, tc):
    """Zero-pad the time axis to a multiple of tc."""
    n_chunks = -(-seq // tc)
    seq_pad = n_chunks * tc
    if seq_pad != seq:
        pad = jnp.zeros((seq_pad - seq,) + x.shape[1:], x.dtype)
        x = jnp.concatenate([x, pad], axis=0)
    return x, seq_pad, n_chunks


def _run_identity(x, h0, time_chunk):
    """Matmul-free specialized path for the module's deterministic weights."""
    seq, batch, hsize = x.shape
    bh = batch * hsize
    # per-time-row bytes: x (double-buffered) + out (double-buffered) + scratch
    row_bytes = 4 * bh * (2 + 2 + 1)
    tc = _choose_time_chunk(seq, time_chunk, row_bytes)
    x, seq_pad, n_chunks = _pad_time(x, seq, tc)
    needs_mask = seq_pad != seq

    x2 = x.reshape(seq_pad, bh)          # lane-dense: trailing dim = batch*hsize
    h02 = h0.reshape(1, bh)

    kernel = functools.partial(_rnn_identity_kernel, hsize=hsize, tc=tc,
                               seq_true=seq, needs_mask=needs_mask)

    out2, hlast2 = pl.pallas_call(
        kernel,
        out_shape=(jax.ShapeDtypeStruct((seq_pad, bh), jnp.float32),
                   jax.ShapeDtypeStruct((1, bh), jnp.float32)),
        grid_spec=pltpu.PrefetchScalarGridSpec(
            num_scalar_prefetch=0,
            grid=(n_chunks,),
            in_specs=[pl.BlockSpec((tc, bh), lambda t: (t, 0)),
                      pl.BlockSpec((1, bh), lambda t: (0, 0))],
            out_specs=(pl.BlockSpec((tc, bh), lambda t: (t, 0)),
                       pl.BlockSpec((1, bh), lambda t: (0, 0))),
            scratch_shapes=[pltpu.VMEM((tc, bh), jnp.float32)]),
        compiler_params=pltpu.CompilerParams(
            dimension_semantics=("arbitrary",),
            vmem_limit_bytes=_VMEM_LIMIT_BYTES),
    )(x2, h02)

    out = out2.reshape(seq_pad, batch, hsize)[:seq]
    return out, hlast2.reshape(1, batch, hsize)


def _run_general(x, h0, w_ih, w_hh, b_ih, b_hh, time_chunk):
    """General tanh-RNN path (arbitrary weights)."""
    seq, batch, isize = x.shape
    hsize = w_ih.shape[0]
    # per-time-row bytes: x (double-buffered) + out (double-buffered) + scratch
    row_bytes = 4 * batch * (2 * isize + 2 * hsize + hsize)
    tc = _choose_time_chunk(seq, time_chunk, row_bytes)
    x, seq_pad, n_chunks = _pad_time(x, seq, tc)
    needs_mask = seq_pad != seq

    x2 = x.reshape(seq_pad * batch, isize)
    b = (b_ih + b_hh).reshape(1, hsize).astype(jnp.float32)

    kernel = functools.partial(_rnn_general_kernel, batch=batch, tc=tc,
                               seq_true=seq, needs_mask=needs_mask)

    out2, hlast = pl.pallas_call(
        kernel,
        out_shape=(jax.ShapeDtypeStruct((seq_pad * batch, hsize), jnp.float32),
                   jax.ShapeDtypeStruct((batch, hsize), jnp.float32)),
        grid_spec=pltpu.PrefetchScalarGridSpec(
            num_scalar_prefetch=0,
            grid=(n_chunks,),
            in_specs=[pl.BlockSpec((tc * batch, isize), lambda t: (t, 0)),
                      pl.BlockSpec((batch, hsize), lambda t: (0, 0)),
                      pl.BlockSpec((isize, hsize), lambda t: (0, 0)),
                      pl.BlockSpec((hsize, hsize), lambda t: (0, 0)),
                      pl.BlockSpec((1, hsize), lambda t: (0, 0))],
            out_specs=(pl.BlockSpec((tc * batch, hsize), lambda t: (t, 0)),
                       pl.BlockSpec((batch, hsize), lambda t: (0, 0))),
            scratch_shapes=[pltpu.VMEM((tc * batch, hsize), jnp.float32)]),
        compiler_params=pltpu.CompilerParams(
            dimension_semantics=("arbitrary",),
            vmem_limit_bytes=_VMEM_LIMIT_BYTES),
    )(x2,
      h0[0].astype(jnp.float32),
      w_ih.T.astype(jnp.float32),        # (isize, hsize)
      w_hh.T.astype(jnp.float32),        # (hsize, hsize)
      b)

    out = out2.reshape(seq_pad, batch, hsize)[:seq]
    return out, hlast[None]


def _is_signed_identity_params(w_ih, w_hh, b_ih, b_hh):
    """True iff the weights match Pixel_RNNcontrol.set_rnnarguments()."""
    try:
        w_ih = np.asarray(w_ih)
        w_hh = np.asarray(w_hh)
        b_ih = np.asarray(b_ih)
        b_hh = np.asarray(b_hh)
    except Exception:                    # traced values -> fall back to general
        return False
    hsize, isize = w_ih.shape
    if hsize != isize or w_hh.shape != (hsize, hsize):
        return False
    signed_eye = np.eye(hsize, dtype=np.float32)
    signed_eye[0, 0] = -1.0
    return (np.array_equal(w_ih.astype(np.float32), signed_eye)
            and np.array_equal(w_hh.astype(np.float32),
                               np.eye(hsize, dtype=np.float32))
            and not np.any(b_ih) and not np.any(b_hh))


def pixel_rnn_control(x, h0, w_ih, w_hh, b_ih, b_hh, *, time_chunk=None,
                      identity_weights=None):
    """x: (seq, batch, isize) f32 (time-major, like torch.nn.RNN batch_first=False);
    h0: (1, batch, hsize) f32.  Returns (out, hidden):
      out: (seq, batch, hsize) = sigmoid(10 * rnnout), hidden: (1, batch, hsize).

    `identity_weights` (static bool) selects the matmul-free fast path; when
    None, the weights are inspected concretely (falls back to the general path
    if they are traced, e.g. under jax.jit)."""
    x = x.astype(jnp.float32)
    h0 = h0.astype(jnp.float32)

    if identity_weights is None:
        identity_weights = _is_signed_identity_params(w_ih, w_hh, b_ih, b_hh)

    if identity_weights:
        return _run_identity(x, h0, time_chunk)
    return _run_general(x, h0, w_ih, w_hh, b_ih, b_hh, time_chunk)


# --------------------------------------------------------------------------- #
# Deterministic parameters + pure-JAX reference
# --------------------------------------------------------------------------- #

def make_rnn_params(isize=2, hsize=2):
    """Deterministic init matching Pixel_RNNcontrol.set_rnnarguments()."""
    w_ih = jnp.zeros((hsize, isize), jnp.float32)
    w_ih = w_ih.at[jnp.arange(hsize), jnp.arange(hsize)].set(1.0)
    w_ih = w_ih.at[0, 0].set(-1.0)       # keys[7] == 'i' branch
    w_hh = jnp.eye(hsize, dtype=jnp.float32)
    b_ih = jnp.zeros((hsize,), jnp.float32)
    b_hh = jnp.zeros((hsize,), jnp.float32)
    return w_ih, w_hh, b_ih, b_hh


def _reference(x, h0, w_ih, w_hh, b_ih, b_hh):
    """Pure-JAX reference of the same forward pass (torch.nn.RNN recurrence)."""
    def step(h, x_t):
        h_new = jnp.tanh(x_t @ w_ih.T + b_ih + h @ w_hh.T + b_hh)
        return h_new, jax.nn.sigmoid(10.0 * h_new)
    h_last, out = lax.scan(step, h0[0], x)
    return out, h_last[None]


# --------------------------------------------------------------------------- #
# Demo / self-test
# --------------------------------------------------------------------------- #

if __name__ == "__main__":
    seq, batch, isize, hsize = 16, 8, 2, 2   # module defaults isize=2, hsize=2, layn=1

    key = jax.random.PRNGKey(0)
    kx, kh, kw1, kw2, kb1, kb2 = jax.random.split(key, 6)
    x = jax.random.normal(kx, (seq, batch, isize), dtype=jnp.float32)
    h0 = jax.random.normal(kh, (1, batch, hsize), dtype=jnp.float32)

    # 1) The module's actual deterministic weights -> matmul-free kernel.
    w_ih, w_hh, b_ih, b_hh = make_rnn_params(isize, hsize)
    out, hidden = pixel_rnn_control(x, h0, w_ih, w_hh, b_ih, b_hh, time_chunk=8)
    out = jax.block_until_ready(out)
    hidden = jax.block_until_ready(hidden)

    out_ref, hidden_ref = _reference(x, h0, w_ih, w_hh, b_ih, b_hh)
    assert out.shape == (seq, batch, hsize)
    assert hidden.shape == (1, batch, hsize)
    assert jnp.allclose(out, out_ref, atol=1e-5, rtol=1e-5)
    assert jnp.allclose(hidden, hidden_ref, atol=1e-5, rtol=1e-5)

    # 2) Non-chunk-aligned sequence length -> padded + masked-carry path.
    seq_odd = 13
    x_odd = x[:seq_odd]
    out_o, hidden_o = pixel_rnn_control(x_odd, h0, w_ih, w_hh, b_ih, b_hh,
                                        time_chunk=8)
    out_o = jax.block_until_ready(out_o)
    hidden_o = jax.block_until_ready(hidden_o)
    out_or, hidden_or = _reference(x_odd, h0, w_ih, w_hh, b_ih, b_hh)
    assert out_o.shape == (seq_odd, batch, hsize)
    assert jnp.allclose(out_o, out_or, atol=1e-5, rtol=1e-5)
    assert jnp.allclose(hidden_o, hidden_or, atol=1e-5, rtol=1e-5)

    # 3) Arbitrary weights -> general kernel path (hoisted VPU projection +
    #    per-step VPU broadcast-FMA recurrence).
    w_ih_r = 0.5 * jax.random.normal(kw1, (hsize, isize), dtype=jnp.float32)
    w_hh_r = 0.5 * jax.random.normal(kw2, (hsize, hsize), dtype=jnp.float32)
    b_ih_r = 0.1 * jax.random.normal(kb1, (hsize,), dtype=jnp.float32)
    b_hh_r = 0.1 * jax.random.normal(kb2, (hsize,), dtype=jnp.float32)
    out_g, hidden_g = pixel_rnn_control(x, h0, w_ih_r, w_hh_r, b_ih_r, b_hh_r,
                                        time_chunk=8)
    out_g = jax.block_until_ready(out_g)
    hidden_g = jax.block_until_ready(hidden_g)

    out_gr, hidden_gr = _reference(x, h0, w_ih_r, w_hh_r, b_ih_r, b_hh_r)
    assert jnp.allclose(out_g, out_gr, atol=1e-5, rtol=1e-5)
    assert jnp.allclose(hidden_g, hidden_gr, atol=1e-5, rtol=1e-5)

    # 4) General path with a non-aligned sequence length.
    out_go, hidden_go = pixel_rnn_control(x_odd, h0, w_ih_r, w_hh_r, b_ih_r,
                                          b_hh_r, time_chunk=8)
    out_go = jax.block_until_ready(out_go)
    hidden_go = jax.block_until_ready(hidden_go)
    out_gor, hidden_gor = _reference(x_odd, h0, w_ih_r, w_hh_r, b_ih_r, b_hh_r)
    assert jnp.allclose(out_go, out_gor, atol=1e-5, rtol=1e-5)
    assert jnp.allclose(hidden_go, hidden_gor, atol=1e-5, rtol=1e-5)

    print("KERNEL_OK")
</pallas_src>

<mosaic_0001>
module attributes {stable_mosaic.version = 11 : i64} {
  func.func @_rnn_identity_kernel(%arg0: i32, %arg1: memref<8x16xf32, #tpu.memory_space<vmem>>, %arg2: memref<1x16xf32, #tpu.memory_space<vmem>>, %arg3: memref<8x16xf32, #tpu.memory_space<vmem>>, %arg4: memref<1x16xf32, #tpu.memory_space<vmem>>, %arg5: memref<8x16xf32, #tpu.memory_space<vmem>>) attributes {dimension_semantics = [#tpu.dimension_semantics<arbitrary>], iteration_bounds = array<i64: 2>, scalar_prefetch = 0 : i64, scratch_operands = 1 : i64, tpu.core_type = #tpu.core_type<tc>, window_params = [{transform_indices = @transform_0, window_bounds = array<i64: 8, 16>}, {pipeline_mode = #tpu.pipeline_mode<synchronous>, transform_indices = @transform_1, window_bounds = array<i64: 1, 16>}, {transform_indices = @transform_2, window_bounds = array<i64: 8, 16>}, {pipeline_mode = #tpu.pipeline_mode<synchronous>, transform_indices = @transform_3, window_bounds = array<i64: 1, 16>}]} {
    %c0_i32 = arith.constant 0 : i32
    %0 = arith.cmpi eq, %arg0, %c0_i32 : i32
    %1 = arith.extui %0 : i1 to i32
    %c0_i32_0 = arith.constant 0 : i32
    %2 = arith.cmpi ne, %1, %c0_i32_0 : i32
    scf.if %2 {
      %c0_40 = arith.constant 0 : index
      %c0_41 = arith.constant 0 : index
      %88 = vector.load %arg2[%c0_40, %c0_41] : memref<1x16xf32, #tpu.memory_space<vmem>>, vector<1x16xf32>
      %c0_42 = arith.constant 0 : index
      %c0_43 = arith.constant 0 : index
      %89 = vector.load %arg4[%c0_42, %c0_43] : memref<1x16xf32, #tpu.memory_space<vmem>>, vector<1x16xf32>
      tpu.vector_store %arg4[%c0_42, %c0_43], %88 {strides = array<i32>} : memref<1x16xf32, #tpu.memory_space<vmem>>, vector<1x16xf32>,
    } else {
    }
    %3 = tpu.iota {dimensions = array<i32: 1>} : vector<1x16xi32>
    %c2_i32 = arith.constant 2 : i32
    %c0_i32_1 = arith.constant 0 : i32
    %4 = arith.cmpi eq, %c2_i32, %c0_i32_1 : i32
    %c1_i32 = arith.constant 1 : i32
    %5 = arith.select %4, %c1_i32, %c2_i32 : i32
    %6 = vector.broadcast %5 : i32 to vector<1x16xi32>
    %7 = arith.remsi %3, %6 : vector<1x16xi32>
    %c0_i32_2 = arith.constant 0 : i32
    %8 = vector.broadcast %c0_i32_2 : i32 to vector<1x16xi32>
    %9 = arith.cmpi ne, %7, %8 : vector<1x16xi32>
    %c0_i32_3 = arith.constant 0 : i32
    %10 = vector.broadcast %c0_i32_3 : i32 to vector<1x16xi32>
    %11 = arith.cmpi slt, %7, %10 : vector<1x16xi32>
    %c0_i32_4 = arith.constant 0 : i32
    %12 = arith.cmpi slt, %5, %c0_i32_4 : i32
    %13 = vector.broadcast %12 : i1 to vector<1x16xi1>
    %14 = vector.broadcast %13 : vector<1x16xi1> to vector<1x16xi1>
    %15 = arith.xori %11, %14 : vector<1x16xi1>
    %16 = arith.andi %15, %9 : vector<1x16xi1>
    %17 = vector.broadcast %5 : i32 to vector<1x16xi32>
    %18 = arith.addi %7, %17 : vector<1x16xi32>
    %19 = arith.select %16, %18, %7 : vector<1x16xi1>, vector<1x16xi32>
    %c0_i32_5 = arith.constant 0 : i32
    %20 = vector.broadcast %c0_i32_5 : i32 to vector<1x16xi32>
    %21 = arith.cmpi eq, %19, %20 : vector<1x16xi32>
    %cst = arith.constant -1.000000e+00 : f32
    %cst_6 = arith.constant 1.000000e+00 : f32
    %22 = vector.broadcast %cst : f32 to vector<1x16xf32>
    %23 = vector.broadcast %cst_6 : f32 to vector<1x16xf32>
    %24 = arith.select %21, %22, %23 : vector<1x16xi1>, vector<1x16xf32>
    %c0 = arith.constant 0 : index
    %c0_7 = arith.constant 0 : index
    %25 = vector.load %arg1[%c0, %c0_7] : memref<8x16xf32, #tpu.memory_space<vmem>>, vector<8x16xf32>
    %26 = vector.broadcast %24 : vector<1x16xf32> to vector<8x16xf32>
    %27 = arith.mulf %25, %26 : vector<8x16xf32>
    %c0_8 = arith.constant 0 : index
    %c0_9 = arith.constant 0 : index
    %28 = vector.load %arg5[%c0_8, %c0_9] : memref<8x16xf32, #tpu.memory_space<vmem>>, vector<8x16xf32>
    tpu.vector_store %arg5[%c0_8, %c0_9], %27 {strides = array<i32>} : memref<8x16xf32, #tpu.memory_space<vmem>>, vector<8x16xf32>,
    %c0_10 = arith.constant 0 : index
    %c0_11 = arith.constant 0 : index
    %29 = vector.load %arg4[%c0_10, %c0_11] : memref<1x16xf32, #tpu.memory_space<vmem>>, vector<1x16xf32>
    %c0_i32_12 = arith.constant 0 : i32
    %30 = arith.index_cast %c0_i32_12 : i32 to index
    %c0_13 = arith.constant 0 : index
    %31 = vector.load %arg5[%30, %c0_13] : memref<8x16xf32, #tpu.memory_space<vmem>>, vector<1x16xf32>
    %32 = arith.addf %31, %29 : vector<1x16xf32>
    %33 = math.tanh %32 : vector<1x16xf32>
    %34 = arith.index_cast %c0_i32_12 : i32 to index
    %c0_14 = arith.constant 0 : index
    %35 = vector.load %arg5[%34, %c0_14] : memref<8x16xf32, #tpu.memory_space<vmem>>, vector<1x16xf32>
    tpu.vector_store %arg5[%34, %c0_14], %33 {strides = array<i32>} : memref<8x16xf32, #tpu.memory_space<vmem>>, vector<1x16xf32>,
    %c1_i32_15 = arith.constant 1 : i32
    %36 = arith.index_cast %c1_i32_15 : i32 to index
    %c0_16 = arith.constant 0 : index
    %37 = vector.load %arg5[%36, %c0_16] : memref<8x16xf32, #tpu.memory_space<vmem>>, vector<1x16xf32>
    %38 = arith.addf %37, %33 : vector<1x16xf32>
    %39 = math.tanh %38 : vector<1x16xf32>
    %40 = arith.index_cast %c1_i32_15 : i32 to index
    %c0_17 = arith.constant 0 : index
    %41 = vector.load %arg5[%40, %c0_17] : memref<8x16xf32, #tpu.memory_space<vmem>>, vector<1x16xf32>
    tpu.vector_store %arg5[%40, %c0_17], %39 {strides = array<i32>} : memref<8x16xf32, #tpu.memory_space<vmem>>, vector<1x16xf32>,
    %c2_i32_18 = arith.constant 2 : i32
    %42 = arith.index_cast %c2_i32_18 : i32 to index
    %c0_19 = arith.constant 0 : index
    %43 = vector.load %arg5[%42, %c0_19] : memref<8x16xf32, #tpu.memory_space<vmem>>, vector<1x16xf32>
    %44 = arith.addf %43, %39 : vector<1x16xf32>
    %45 = math.tanh %44 : vector<1x16xf32>
    %46 = arith.index_cast %c2_i32_18 : i32 to index
    %c0_20 = arith.constant 0 : index
    %47 = vector.load %arg5[%46, %c0_20] : memref<8x16xf32, #tpu.memory_space<vmem>>, vector<1x16xf32>
    tpu.vector_store %arg5[%46, %c0_20], %45 {strides = array<i32>} : memref<8x16xf32, #tpu.memory_space<vmem>>, vector<1x16xf32>,
    %c3_i32 = arith.constant 3 : i32
    %48 = arith.index_cast %c3_i32 : i32 to index
    %c0_21 = arith.constant 0 : index
    %49 = vector.load %arg5[%48, %c0_21] : memref<8x16xf32, #tpu.memory_space<vmem>>, vector<1x16xf32>
    %50 = arith.addf %49, %45 : vector<1x16xf32>
    %51 = math.tanh %50 : vector<1x16xf32>
    %52 = arith.index_cast %c3_i32 : i32 to index
    %c0_22 = arith.constant 0 : index
    %53 = vector.load %arg5[%52, %c0_22] : memref<8x16xf32, #tpu.memory_space<vmem>>, vector<1x16xf32>
    tpu.vector_store %arg5[%52, %c0_22], %51 {strides = array<i32>} : memref<8x16xf32, #tpu.memory_space<vmem>>, vector<1x16xf32>,
    %c4_i32 = arith.constant 4 : i32
    %54 = arith.index_cast %c4_i32 : i32 to index
    %c0_23 = arith.constant 0 : index
    %55 = vector.load %arg5[%54, %c0_23] : memref<8x16xf32, #tpu.memory_space<vmem>>, vector<1x16xf32>
    %56 = arith.addf %55, %51 : vector<1x16xf32>
    %57 = math.tanh %56 : vector<1x16xf32>
    %58 = arith.index_cast %c4_i32 : i32 to index
    %c0_24 = arith.constant 0 : index
    %59 = vector.load %arg5[%58, %c0_24] : memref<8x16xf32, #tpu.memory_space<vmem>>, vector<1x16xf32>
    tpu.vector_store %arg5[%58, %c0_24], %57 {strides = array<i32>} : memref<8x16xf32, #tpu.memory_space<vmem>>, vector<1x16xf32>,
    %c5_i32 = arith.constant 5 : i32
    %60 = arith.index_cast %c5_i32 : i32 to index
    %c0_25 = arith.constant 0 : index
    %61 = vector.load %arg5[%60, %c0_25] : memref<8x16xf32, #tpu.memory_space<vmem>>, vector<1x16xf32>
    %62 = arith.addf %61, %57 : vector<1x16xf32>
    %63 = math.tanh %62 : vector<1x16xf32>
    %64 = arith.index_cast %c5_i32 : i32 to index
    %c0_26 = arith.constant 0 : index
    %65 = vector.load %arg5[%64, %c0_26] : memref<8x16xf32, #tpu.memory_space<vmem>>, vector<1x16xf32>
    tpu.vector_store %arg5[%64, %c0_26], %63 {strides = array<i32>} : memref<8x16xf32, #tpu.memory_space<vmem>>, vector<1x16xf32>,
    %c6_i32 = arith.constant 6 : i32
    %66 = arith.index_cast %c6_i32 : i32 to index
    %c0_27 = arith.constant 0 : index
    %67 = vector.load %arg5[%66, %c0_27] : memref<8x16xf32, #tpu.memory_space<vmem>>, vector<1x16xf32>
    %68 = arith.addf %67, %63 : vector<1x16xf32>
    %69 = math.tanh %68 : vector<1x16xf32>
    %70 = arith.index_cast %c6_i32 : i32 to index
    %c0_28 = arith.constant 0 : index
    %71 = vector.load %arg5[%70, %c0_28] : memref<8x16xf32, #tpu.memory_space<vmem>>, vector<1x16xf32>
    tpu.vector_store %arg5[%70, %c0_28], %69 {strides = array<i32>} : memref<8x16xf32, #tpu.memory_space<vmem>>, vector<1x16xf32>,
    %c7_i32 = arith.constant 7 : i32
    %72 = arith.index_cast %c7_i32 : i32 to index
    %c0_29 = arith.constant 0 : index
    %73 = vector.load %arg5[%72, %c0_29] : memref<8x16xf32, #tpu.memory_space<vmem>>, vector<1x16xf32>
    %74 = arith.addf %73, %69 : vector<1x16xf32>
    %75 = math.tanh %74 : vector<1x16xf32>
    %76 = arith.index_cast %c7_i32 : i32 to index
    %c0_30 = arith.constant 0 : index
    %77 = vector.load %arg5[%76, %c0_30] : memref<8x16xf32, #tpu.memory_space<vmem>>, vector<1x16xf32>
    tpu.vector_store %arg5[%76, %c0_30], %75 {strides = array<i32>} : memref<8x16xf32, #tpu.memory_space<vmem>>, vector<1x16xf32>,
    %c8_i32 = arith.constant 8 : i32
    %c0_31 = arith.constant 0 : index
    %c0_32 = arith.constant 0 : index
    %78 = vector.load %arg4[%c0_31, %c0_32] : memref<1x16xf32, #tpu.memory_space<vmem>>, vector<1x16xf32>
    tpu.vector_store %arg4[%c0_31, %c0_32], %75 {strides = array<i32>} : memref<1x16xf32, #tpu.memory_space<vmem>>, vector<1x16xf32>,
    %c0_33 = arith.constant 0 : index
    %c0_34 = arith.constant 0 : index
    %79 = vector.load %arg5[%c0_33, %c0_34] : memref<8x16xf32, #tpu.memory_space<vmem>>, vector<8x16xf32>
    %cst_35 = arith.constant 5.000000e+00 : f32
    %80 = vector.broadcast %cst_35 : f32 to vector<8x16xf32>
    %81 = arith.mulf %80, %79 : vector<8x16xf32>
    %82 = math.tanh %81 : vector<8x16xf32>
    %cst_36 = arith.constant 1.000000e+00 : f32
    %83 = vector.broadcast %cst_36 : f32 to vector<8x16xf32>
    %84 = arith.addf %83, %82 : vector<8x16xf32>
    %cst_37 = arith.constant 5.000000e-01 : f32
    %85 = vector.broadcast %cst_37 : f32 to vector<8x16xf32>
    %86 = arith.mulf %85, %84 : vector<8x16xf32>
    %c0_38 = arith.constant 0 : index
    %c0_39 = arith.constant 0 : index
    %87 = vector.load %arg3[%c0_38, %c0_39] : memref<8x16xf32, #tpu.memory_space<vmem>>, vector<8x16xf32>
    tpu.vector_store %arg3[%c0_38, %c0_39], %86 {strides = array<i32>} : memref<8x16xf32, #tpu.memory_space<vmem>>, vector<8x16xf32>,
    return
  }
  func.func @transform_0(%arg0: i32) -> (i32, i32) {
    %c0_i32 = arith.constant 0 : i32
    %c0_i32_0 = arith.constant 0 : i32
    return %arg0, %c0_i32 : i32, i32
  }
  func.func @transform_1(%arg0: i32) -> (i32, i32) {
    %c0_i32 = arith.constant 0 : i32
    %c0_i32_0 = arith.constant 0 : i32
    %c0_i32_1 = arith.constant 0 : i32
    return %c0_i32, %c0_i32_0 : i32, i32
  }
  func.func @transform_2(%arg0: i32) -> (i32, i32) {
    %c0_i32 = arith.constant 0 : i32
    %c0_i32_0 = arith.constant 0 : i32
    return %arg0, %c0_i32 : i32, i32
  }
  func.func @transform_3(%arg0: i32) -> (i32, i32) {
    %c0_i32 = arith.constant 0 : i32
    %c0_i32_0 = arith.constant 0 : i32
    %c0_i32_1 = arith.constant 0 : i32
    return %c0_i32, %c0_i32_0 : i32, i32
  }
}

</mosaic_0001>

<bundles_post_ra>
// kernel: tpu_custom_call.1
= control target key start
LH: loop header
LB: loop body
LE: loop exit
PB: predicated region body
PF: predicated region fallthrough
CT: control target
= control target key end

     0   :  { %9 = vsyncpa [#allocation4], 0  ;;  %s802_s0 = inlined_call_operand.hbm [shape: f32[16,16], index: 0, kind: input, shape index: {}]   ;;  %s803_s1 = inlined_call_operand.vmem [shape: f32[1,16], index: 1, kind: input, shape index: {}]   ;;  %s804_s2 = inlined_call_operand.hbm [shape: f32[16,16], index: 2, kind: output, shape index: {0}]   ;;  %s805_s3 = inlined_call_operand.hbm [shape: f32[1,16], index: 3, kind: output, shape index: {1}]  }
   0x1   :  { %11 = vsyncpa [#allocation4 + $0x1], 0 }
   0x2   :  { %12 = vsyncpa [#allocation5], 0 }
   0x3   :  { %14 = vsyncpa [#allocation5 + $0x1], 0 }
   0x4   :  { %15 = vsyncpa [#allocation8], 0  ;;  %s598_s12 = smov 0   ;;  %s600_s13 = smov 0  }
   0x5   :  { %s602_s14 = smov 0   ;;  %s604_s15 = smov 0  }
   0x6 LB: > { %s619_s16 = sadd.s32 4294967295, %s572_s15   ;;  %s359_s17 = sadd.s32 4294967294, %s572_s15   ;;  %s572_s15 = sphi %s604_s15, %s826_s15   ;;  %s568_s14 = sphi %s602_s14, %s825_s14   ;;  %s564_s13 = sphi %s600_s13, %s824_s13   ;;  %s560_s12 = sphi %s598_s12, %s823_s12  }
   0x7   : > { %s623_s18 = sadd.s32 1, %s572_s15   ;;  %s28_s19 = sadd.s32 1, %s568_s14 }
   0x8   : > { %s25_s20 = ssub.s32 %s572_s15, %s623_s18  ;;  %p35_p0 = scmp.ne.s32.totalorder %s568_s14, %s564_s13 }
   0x9   : > { %p26_p1 = scmp.eq.s32.totalorder %s25_s20, 0  ;;  %p36_p2 = scmp.eq.s32.totalorder %s572_s15, 0 }
   0xa   : > { %p41_p3 = scmp.ne.s32.totalorder %s564_s13, %s560_s12  ;;  %p42_p4 = scmp.eq.s32.totalorder %s619_s16, 0 }
   0xb   : > { %s635_s21 = scalar_select %p26_p1, %s568_s14, %s28_s19  }
   0xc   : > { %p637_p5 = por %p36_p2, %p35_p0  ;;  %p641_p6 = por %p42_p4, %p41_p3 }
   0xd   : > { %p806_p7 = scmp.eq.s32.totalorder %s619_s16, 1  ;;  %p92_p8 = scmp.eq.s32.totalorder %s359_s17, 1 }
   0xe   : > { %p390_p10 = scmp.lt.s32.totalorder %s572_s15, 2  ;;  %s136_s26 = sand.u32 1, %s568_s14  }
   0xf   : > { %p650_p11 = por %p806_p7, %p35_p0  ;;  %p654_p12 = por %p92_p8, %p41_p3 }
  0x10   : > { %s363_s27 = sshll.u32 %s572_s15, 7  ;;  %s362_s28 = sshll.u32 %s136_s26, 3 }
  0x11   : > { %s810_s24 = scalar_select %p650_p11, 1, 0 }
  0x12   : > { %s811_s25 = scalar_select %p654_p12, 1, 0 }
  0x13   : > { %s663_s4 = scalar_lea.hbm %s802_s0, %s363_s27  ;;  %s140_s5 = scalar_lea.vmem [#allocation3], %s362_s28 }
  0x14   : > { %s147_s6 = sshll.u32 %s140_s5, 4  ;;  %p667_p13 = pnand %p390_p10, %p637_p5  ;;  %s671_s6 = int_to_ptr.vmem [resolvable:$true] %s147_s6 }
  0x15   : > { %s137_s8 = scalar_lea.sflag [#allocation4], %s136_s26  ;;  %s446_s9 = scalar_lea.hbm %s663_s4, 128 }
  0x16   : > { %p447_p2 = scmp.ne.s32.totalorder %s663_s4, %s446_s9  ;;  %p448_p3 = pneg %p667_p13 }
  0x17   : > { %s451_s17 = scalar_lea.hbm %s802_s0, 256  ;;  %p452_p5 = scmp.lt.u32.totalorder %s663_s4, %s802_s0 }
  0x18   : > { %p449_p4 = pnand %p448_p3, %p447_p2  ;;  %p453_p10 = scmp.lt.u32.totalorder %s451_s17, %s446_s9 }
  0x19   : > { %p455_p7 = scmp.lt.u32.totalorder %s446_s9, %s663_s4 }
  0x1a   : > { %p450_p8 = pneg %p449_p4  ;;  %p454_p9 = por %p453_p10, %p452_p5 }
  0x1c   : > { %p456_p0 = por %p455_p7, %p454_p9 }
  0x1e   : > { %p457_p1 = pnand %p456_p0, %p450_p8 }
  0x20   : > { %460 = shalt.err (!%p457_p1)
}
  0x21   : > { %s461_s22 = scalar_lea.vmem %s671_s6, 128  ;;  %s574_s26 = smov [#allocation3]  }
  0x22   : > { %p462_p2 = scmp.ne.s32.totalorder %s671_s6, %s461_s22  ;;  %s466_s27 = sshll.u32 %s574_s26, 4  ;;  %s467_s27 = int_to_ptr.vmem [resolvable:$false] %s466_s27 }
  0x23   : > { %s468_s28 = scalar_lea.vmem %s467_s27, 256  ;;  %p469_p11 = scmp.lt.s32.totalorder %s671_s6, %s467_s27 }
  0x24   : > { %p464_p4 = pnand %p462_p2, %p448_p3  ;;  %p470_p5 = scmp.lt.s32.totalorder %s468_s28, %s461_s22 }
  0x26   : > { %p465_p12 = pneg %p464_p4  ;;  %p471_p10 = por %p470_p5, %p469_p11 }
  0x28   : > { %p472_p7 = pnand %p471_p10, %p465_p12 }
  0x2a   : > { %475 = shalt.err (!%p472_p7)
}
  0x2b   : > { %385 = dma.hbm_to_vmem [thread:$0]  (!%p667_p13), %s663_s4, 128, %s671_s6, %s137_s8  }
  0x2c   : > { %p813_p9 = scmp.lt.s32.totalorder %s572_s15, 3  ;;  %p814_p0 = scmp.ge.s32.totalorder %s572_s15, 1 }
  0x2e   : > { %p153_p1 = pnand %p814_p0, %p813_p9 }
  0x2f   : > { %s705_s29 = sand.u32 (!%p153_p1), 1, %s564_s13  }
  0x30   : > { %156 = sbr.rel (%p153_p1) target bundleno = 236 (0xec), region = 28  ;;  %s365_s30 = sshll.u32 (!%p153_p1), %s705_s29, 3 }
  0x31   : > { %s159_s5 = scalar_lea.sflag (!%p153_p1), [#allocation4], %s705_s29  ;;  %s162_s9 = scalar_lea.vmem (!%p153_p1), [#allocation3], %s365_s30 }
  0x37   : > { %547 = dma.done.wait (%p641_p6), %s159_s5, 128  }
  0x38   : > { %549 = vsyncadd (%p641_p6), %s159_s5, 4294967168  ;;  %s713_s7 = scalar_lea.vmem [#allocation6], %s365_s30  ;;  %p367_p11 = scmp.ne.s32.totalorder %s619_s16, 0 }
  0x39   : > { %v189_v0 = vld [vmem:[%s803_s1] sm:$0x1] (!%p367_p11)  ;;  %vm190_vm0 = vcmask (!%p367_p11), 122880  }
  0x3a   : > { %188 = sbr.rel (%p367_p11) target bundleno = 65 (0x41), region = 36  ;;  %191 = vst.msk [vmem:[#allocation7] sm:$0x1] (!%p367_p11), %vm190_vm0, %v189_v0 }
  0x41 PF: > { %v192_v1 = vlaneseq  ;;  %v208_v4 = vld [vmem:[%s162_s9] sm:$0xff]  ;;  %v575_v5 = vmov 1.0   ;;  %vm210_vm2 = vcmask 130048   ;;  %vm216_vm3 = vcmask 122880   ;;  %s576_s23 = smov [#allocation7]   ;;  %p815_p12 = scmp.eq.s32.totalorder %s619_s16, 1 }
  0x42   : > { %v212_v8 = vld [vmem:[#allocation7] sm:$0x1]  ;;  %s278_s8 = sshll.u32 %s576_s23, 4  ;;  %s279_s8 = int_to_ptr.vmem [resolvable:$true] %s278_s8 }
  0x43   : > { %v193_v2 = vand.u32 127, %v192_v1  ;;  %s476_s10 = scalar_lea.vmem %s279_s8, 16  ;;  %s482_s11 = scalar_lea.vmem %s279_s8, 32 }
  0x44   : > { %p477_p6 = scmp.ne.s32.totalorder %s279_s8, %s476_s10  ;;  %p483_p8 = scmp.lt.s32.totalorder %s279_s8, %s279_s8 }
  0x45   : > { %v198_v3 = vand.u32 1, %v193_v2  ;;  %p484_p2 = scmp.lt.s32.totalorder %s482_s11, %s476_s10 }
  0x46   : > { %p478_p13 = pnand %p477_p6, %p815_p12 }
  0x47   : > { %vm206_vm1 = vcmp.eq.s32.totalorder %v198_v3, 0  ;;  %p485_p4 = por %p484_p2, %p483_p8 }
  0x48   : > { %v207_v6 = vsel %vm206_vm1, -1.0, %v575_v5  ;;  %p479_p3 = pneg %p478_p13 }
  0x49   : > { %v209_v7 = vmul.f32 %v208_v4, %v207_v6 }
  0x4a   : > { %p486_p5 = pnand %p485_p4, %p479_p3 }
  0x4b   : > { %211 = vst.msk [vmem:[#allocation2] sm:$0xff] %vm210_vm2, %v209_v7 }
  0x52   : > { %v213_v9 = vld [vmem:[#allocation2] sm:$0x1]  ;;  %v218_v12 = vld [vmem:[#allocation2 + $0x1] sm:$0x1]  ;;  %v222_v15 = vld [vmem:[#allocation2 + $0x2] sm:$0x1] }
  0x53   : > { %v214_v10 = vadd.f32 %v213_v9, %v212_v8  ;;  %v226_v18 = vld [vmem:[#allocation2 + $0x3] sm:$0x1]  ;;  %v230_v21 = vld [vmem:[#allocation2 + $0x4] sm:$0x1]  ;;  %v234_v24 = vld [vmem:[#allocation2 + $0x5] sm:$0x1] }
  0x54   : > { %v238_v27 = vld [vmem:[#allocation2 + $0x6] sm:$0x1]  ;;  %v242_v30 = vld [vmem:[#allocation2 + $0x7] sm:$0x1] }
  0x55   : > { %428 = vtanh.f32 %v214_v10 }
  0x5f   : > { %v429_v11 = vpop.eup %428 }
  0x60   : > { %217 = vst.msk [vmem:[#allocation2] sm:$0x1] %vm216_vm3, %v429_v11  ;;  %v219_v13 = vadd.f32 %v429_v11, %v218_v12 }
  0x62   : > { %430 = vtanh.f32 %v219_v13 }
  0x6c   : > { %v431_v14 = vpop.eup %430 }
  0x6d   : > { %221 = vst.msk [vmem:[#allocation2 + $0x1] sm:$0x1] %vm216_vm3, %v431_v14  ;;  %v223_v16 = vadd.f32 %v431_v14, %v222_v15 }
  0x6f   : > { %432 = vtanh.f32 %v223_v16 }
  0x79   : > { %v433_v17 = vpop.eup %432 }
  0x7a   : > { %225 = vst.msk [vmem:[#allocation2 + $0x2] sm:$0x1] %vm216_vm3, %v433_v17  ;;  %v227_v19 = vadd.f32 %v433_v17, %v226_v18 }
  0x7c   : > { %434 = vtanh.f32 %v227_v19 }
  0x86   : > { %v435_v20 = vpop.eup %434 }
  0x87   : > { %229 = vst.msk [vmem:[#allocation2 + $0x3] sm:$0x1] %vm216_vm3, %v435_v20  ;;  %v231_v22 = vadd.f32 %v435_v20, %v230_v21 }
  0x89   : > { %436 = vtanh.f32 %v231_v22 }
  0x93   : > { %v437_v23 = vpop.eup %436 }
  0x94   : > { %233 = vst.msk [vmem:[#allocation2 + $0x4] sm:$0x1] %vm216_vm3, %v437_v23  ;;  %v235_v25 = vadd.f32 %v437_v23, %v234_v24 }
  0x96   : > { %438 = vtanh.f32 %v235_v25 }
  0xa0   : > { %v439_v26 = vpop.eup %438 }
  0xa1   : > { %237 = vst.msk [vmem:[#allocation2 + $0x5] sm:$0x1] %vm216_vm3, %v439_v26  ;;  %v239_v28 = vadd.f32 %v439_v26, %v238_v27 }
  0xa3   : > { %440 = vtanh.f32 %v239_v28 }
  0xad   : > { %v441_v29 = vpop.eup %440 }
  0xae   : > { %241 = vst.msk [vmem:[#allocation2 + $0x6] sm:$0x1] %vm216_vm3, %v441_v29  ;;  %v243_v31 = vadd.f32 %v441_v29, %v242_v30 }
  0xb0   : > { %442 = vtanh.f32 %v243_v31 }
  0xba   : > { %v443_v32 = vpop.eup %442 }
  0xbb   : > { %245 = vst.msk [vmem:[#allocation2 + $0x7] sm:$0x1] %vm216_vm3, %v443_v32  ;;  %246 = vst.msk [vmem:[#allocation7] sm:$0x1] %vm216_vm3, %v443_v32 }
  0xbc   : > { %489 = shalt.err (!%p486_p5)
}
  0xbd   : > { %s490_s20 = scalar_lea.hbm %s805_s3, 16  ;;  %p816_p7 = pmov %p815_p12 }
  0xbe   : > { %p491_p10 = scmp.ne.s32.totalorder %s805_s3, %s490_s20  ;;  %p496_p1 = scmp.lt.u32.totalorder %s490_s20, %s805_s3 }
  0xc0   : > { %p492_p9 = pnand %p491_p10, %p816_p7 }
  0xc2   : > { %p493_p0 = pneg %p492_p9 }
  0xc4   : > { %p498_p11 = pnand %p496_p1, %p493_p0 }
  0xc6   : > { %501 = shalt.err (!%p498_p11)
}
  0xc7   : > { %p817_p6 = pmov %p816_p7  ;;  %v247_v33 = vld [vmem:[#allocation2] sm:$0xff]  ;;  %s369_s9 = sshll.u32 %s619_s16, 7 }
  0xc8   : > { %v248_v34 = vmul.f32 5.0, %v247_v33  ;;  %s267_s4 = sshll.u32 %s713_s7, 4  ;;  %s752_s10 = scalar_lea.hbm %s804_s2, %s369_s9  ;;  %s754_s4 = int_to_ptr.vmem [resolvable:$true] %s267_s4 }
  0xc9   : > { %378 = dma.vmem_to_hbm [thread:$0]  (%p817_p6), %s279_s8, 16, %s805_s3, [#allocation8]  }
  0xca   : > { %444 = vtanh.f32 %v248_v34  ;;  %s254_s8 = scalar_lea.sflag [#allocation5], %s705_s29  ;;  %s502_s11 = scalar_lea.vmem %s754_s4, 128 }
  0xcb   : > { %p503_p12 = scmp.ne.s32.totalorder %s754_s4, %s502_s11  ;;  %p818_p13 = scmp.ne.s32.totalorder %s810_s24, 0 }
  0xcc   : > { %s577_s17 = smov [#allocation6]  }
  0xcd   : > { %p504_p3 = pnand %p503_p12, %p818_p13  ;;  %s506_s19 = sshll.u32 %s577_s17, 4  ;;  %s507_s19 = int_to_ptr.vmem [resolvable:$false] %s506_s19 }
  0xce   : > { %s508_s20 = scalar_lea.vmem %s507_s19, 256  ;;  %p509_p2 = scmp.lt.s32.totalorder %s754_s4, %s507_s19 }
  0xcf   : > { %p505_p8 = pneg %p504_p3  ;;  %p510_p4 = scmp.lt.s32.totalorder %s508_s20, %s502_s11 }
  0xd1   : > { %p511_p5 = por %p510_p4, %p509_p2 }
  0xd3   : > { %p512_p10 = pnand %p511_p5, %p505_p8 }
  0xd4   : > { %v445_v35 = vpop.eup %444 }
  0xd5   : > { %v250_v36 = vadd.f32 1.0, %v445_v35 }
  0xd7   : > { %v251_v37 = vmul.f32 0.5, %v250_v36 }
  0xd9   : > { %252 = vst.msk [vmem:[%s713_s7] sm:$0xff] %vm210_vm2, %v251_v37 }
  0xda   : > { %515 = shalt.err (!%p512_p10)
}
  0xdb   : > { %s516_s29 = scalar_lea.hbm %s752_s10, 128  ;;  %s520_s26 = scalar_lea.hbm %s804_s2, 256 }
  0xdc   : > { %p517_p7 = scmp.ne.s32.totalorder %s752_s10, %s516_s29  ;;  %p521_p1 = scmp.lt.u32.totalorder %s752_s10, %s804_s2 }
  0xdd   : > { %p522_p11 = scmp.lt.u32.totalorder %s520_s26, %s516_s29  ;;  %p524_p12 = scmp.lt.u32.totalorder %s516_s29, %s752_s10 }
  0xde   : > { %p518_p9 = pnand %p517_p7, %p818_p13 }
  0xdf   : > { %p523_p6 = por %p522_p11, %p521_p1 }
  0xe0   : > { %p519_p0 = pneg %p518_p9 }
  0xe1   : > { %p525_p3 = por %p524_p12, %p523_p6 }
  0xe3   : > { %p526_p8 = pnand %p525_p3, %p519_p0 }
  0xe5   : > { %529 = shalt.err (!%p526_p8)
}
  0xe6   : > { %376 = dma.vmem_to_hbm [thread:$0]  (%p818_p13), %s754_s4, 128, %s752_s10, %s254_s8  }
  0xe7   : > { %p819_p2 = scmp.eq.s32.totalorder %s619_s16, 1 }
  0xe9   : > { %551 = dma.done.wait (%p819_p2), [#allocation8], 16   ;;  %p820_p4 = pmov %p819_p2 }
  0xeb   : > { %553 = vsyncadd (%p820_p4), [#allocation8], 4294967280 }
  0xec PF: > { %s294_s30 = sand.u32 1, %s560_s12   ;;  %p821_p5 = scmp.ne.s32.totalorder %s811_s25, 0 }
  0xed   : > { %p822_p10 = scmp.ge.s32.totalorder %s572_s15, 2  ;;  %s295_s5 = scalar_lea.sflag [#allocation5], %s294_s30 }
  0xef   : > { %p387_p7 = pnand %p822_p10, %p821_p5 }
  0xf1   : > { %555 = dma.done.wait (!%p387_p7), %s295_s5, 128  }
  0xf2   : > { %557 = vsyncadd (!%p387_p7), %s295_s5, 4294967168  ;;  %p18_p13 = scmp.ge.s32.totalorder %s623_s18, 4   ;;  %s823_s12 = smov %s564_s13 }
  0xf3   : > { %s824_s13 = smov %s568_s14  ;;  %s825_s14 = smov %s635_s21 }
  0xf4   : > { %s826_s15 = smov %s623_s18  ;;  %20 = sbr.rel (!%p18_p13) target bundleno = 6 (0x6), region = 85 }
  0xfb   :  { %300 = vsyncpa [#allocation4], 1 }
  0xfc   :  { %302 = vsyncpa [#allocation4 + $0x1], 1 }
  0xfd   :  { %303 = vsyncpa [#allocation5], 1 }
  0xfe   :  { %305 = vsyncpa [#allocation5 + $0x1], 1 }
  0xff   :  { %306 = vsyncpa [#allocation8], 1 }

</bundles_post_ra>
